<compile_context>
chip_gen: v7x
topology: tpu7x:2x2x1
jax: 0.10.0
libtpu: 0.0.40
codegen_flags: <defaults>
</compile_context>

<pallas_src>
import sys

import jax
import jax.numpy as jnp
from jax.experimental import pallas as pl
from jax.experimental.pallas import tpu as pltpu


# ---------------------------------------------------------------------------
# Kernels
# ---------------------------------------------------------------------------

def _l2norm(h):
    # F.normalize(h, dim=-1): h / max(||h||, 1e-12) == h * rsqrt(max(||h||^2, 1e-24))
    inv = jax.lax.rsqrt(jnp.maximum(jnp.sum(h * h, axis=-1, keepdims=True), 1e-24))
    return h * inv


def autoenc_kernel_overlap(x_ref, w1_ref, t_ref, w2_hbm, out_ref, vec_ref,
                           w2_vmem, w2_sem):
    """Fused forward; W2 HBM->VMEM copy is overlapped with the first matmul.

    Requires in-order grid execution on a single core (dimension_semantics
    "arbitrary"): W2 is fetched once on grid step 0 and reused afterwards.
    """
    first = pl.program_id(0) == 0

    @pl.when(first)
    def _start_w2():
        pltpu.make_async_copy(w2_hbm, w2_vmem, w2_sem).start()

    # enc1: Linear + eval BatchNorm (scale folded into W1 columns; shift = t[0]).
    h1 = jnp.dot(x_ref[...], w1_ref[...], preferred_element_type=jnp.float32)
    h1 = h1 + t_ref[0:1, :]
    out_ref[...] = _l2norm(h1).astype(out_ref.dtype)

    @pl.when(first)
    def _wait_w2():
        pltpu.make_async_copy(w2_hbm, w2_vmem, w2_sem).wait()

    # enc2 consumes the *un-normalized* h1 (matches the PyTorch graph).
    h2 = jnp.dot(h1.astype(w2_vmem.dtype), w2_vmem[...],
                 preferred_element_type=jnp.float32)
    h2 = h2 + t_ref[1:2, :]
    vec_ref[...] = _l2norm(h2).astype(vec_ref.dtype)


def autoenc_kernel_resident(x_ref, w1_ref, t_ref, w2_ref, out_ref, vec_ref):
    """Same math; W2 handled by the BlockSpec pipeline (megacore-parallel safe)."""
    h1 = jnp.dot(x_ref[...], w1_ref[...], preferred_element_type=jnp.float32)
    h1 = h1 + t_ref[0:1, :]
    out_ref[...] = _l2norm(h1).astype(out_ref.dtype)

    h2 = jnp.dot(h1.astype(w2_ref.dtype), w2_ref[...],
                 preferred_element_type=jnp.float32)
    h2 = h2 + t_ref[1:2, :]
    vec_ref[...] = _l2norm(h2).astype(vec_ref.dtype)


# ---------------------------------------------------------------------------
# Weight preparation (hoisted out of the per-call path)
# ---------------------------------------------------------------------------

def fold_bn_into_weight(w, b, gamma, beta, mean, var, eps=1e-5):
    """Fold Linear bias + eval-mode BatchNorm1d fully into (W^T * s, shift).

    y = gamma * ((x @ W^T + b) - mean) / sqrt(var+eps) + beta
      = x @ (W^T * s) + ((b - mean) * s + beta),   s = gamma / sqrt(var+eps)
    """
    s = gamma / jnp.sqrt(var + eps)
    w_t_scaled = (w.T * s[None, :]).astype(jnp.bfloat16)   # bf16 MXU input
    shift = ((b - mean) * s + beta).astype(jnp.float32)
    return w_t_scaled, shift


def prepare_params(p):
    """One-time weight prep: fold BN, transpose, cast to bf16, stack shifts."""
    w1, t1 = fold_bn_into_weight(p["w1"], p["b1"], p["g1"], p["beta1"],
                                 p["m1"], p["v1"])
    w2, t2 = fold_bn_into_weight(p["w2"], p["b2"], p["g2"], p["beta2"],
                                 p["m2"], p["v2"])
    assert t1.shape == t2.shape, "AutoEnc requires out_dim == vec_dim for enc2"
    t = jnp.stack([t1, t2], axis=0)                        # (2, V) resident shifts
    return dict(w1=w1, w2=w2, t=t)


# ---------------------------------------------------------------------------
# Host-side wrapper
# ---------------------------------------------------------------------------

def _round_up(n, m):
    return ((n + m - 1) // m) * m


def _device_kind():
    try:
        return jax.devices()[0].device_kind.lower()
    except Exception:  # pragma: no cover
        return ""


def _vmem_limit_bytes(kind):
    """Per-generation scoped-VMEM limit (v7x has only 64 MiB physical per TC)."""
    if "v7" in kind:
        return 56 << 20
    return 100 << 20  # v5e / v6e: 128 MiB physical VMEM


def _const_spec(shape, single_buffer):
    """Constant-index (grid-invariant) operand: resident in VMEM across the grid."""
    if single_buffer:
        # Double-buffering a constant-index block buys nothing; halve its VMEM.
        return pl.BlockSpec(shape, lambda i: (0, 0), pipeline_mode=pl.Buffered(1))
    return pl.BlockSpec(shape, lambda i: (0, 0))


def autoenc_forward(x, prep, tb=None, out_dtype=None):
    """Eval-mode AutoEnc forward: returns (data['out'], data['vec'])."""
    B, D = x.shape
    w1, w2, t = prep["w1"], prep["w2"], prep["t"]
    V = w1.shape[1]
    assert w1.shape == (D, V) and w2.shape == (V, V) and t.shape == (2, V)

    out_dtype = x.dtype if out_dtype is None else jnp.dtype(out_dtype)
    kind = _device_kind()
    is_v7x = "v7" in kind

    # Batch tile: multiple of 16 rows (bf16 packs 2 rows/sublane).  v6e's
    # 128 MiB VMEM affords 512-row tiles; v7x (64 MiB) stays at 256.
    if tb is None:
        tb = 512 if ("v6" in kind and B >= 512) else 256
    tb = max(16, min(int(tb), _round_up(B, 16)))
    tb = _round_up(tb, 16)
    num_tiles = pl.cdiv(B, tb)

    # v7x only: force >=2 grid steps so both TensorCores share the batch —
    # worthwhile only when B is large enough to amortize duplicated weight DMA.
    if is_v7x and num_tiles == 1 and B >= 512:
        tb = _round_up(pl.cdiv(B, 2), 16)
        num_tiles = pl.cdiv(B, tb)

    B_pad = num_tiles * tb
    xb = x.astype(jnp.bfloat16)
    if B_pad != B:
        xb = jnp.pad(xb, ((0, B_pad - B), (0, 0)))

    # Megacore ("parallel") sharding would break the step-0 W2 load gate, so it
    # only uses the resident-W2 variant; everywhere else we hide W2's DMA
    # behind the first matmul.
    use_resident_w2 = is_v7x and num_tiles >= 2

    out_shape = (
        jax.ShapeDtypeStruct((B_pad, V), out_dtype),   # data['out']
        jax.ShapeDtypeStruct((B_pad, V), out_dtype),   # data['vec']
    )
    row = lambda i: (i, 0)

    itemsize = lambda a: a.size * a.dtype.itemsize
    cost = pl.CostEstimate(
        flops=2 * B_pad * D * V + 2 * B_pad * V * V + 8 * B_pad * V,
        transcendentals=2 * B_pad,
        bytes_accessed=(itemsize(xb) + itemsize(w1) + itemsize(w2) + itemsize(t)
                        + 2 * B_pad * V * out_dtype.itemsize),
    )

    def call(single_buffer_weights):
        const = lambda shape: _const_spec(shape, single_buffer_weights)
        if use_resident_w2:
            kernel = autoenc_kernel_resident
            in_specs = [
                pl.BlockSpec((tb, D), row),   # x tile (bf16)
                const((D, V)),                # W1 (bf16, scale-folded, resident)
                const((2, V)),                # shifts [t1; t2] (f32, resident)
                const((V, V)),                # W2 (bf16, resident)
            ]
            scratch_shapes = ()
            semantics = ("parallel",)
        else:
            kernel = autoenc_kernel_overlap
            in_specs = [
                pl.BlockSpec((tb, D), row),          # x tile (bf16)
                const((D, V)),                       # W1 (bf16, resident)
                const((2, V)),                       # shifts (f32, resident)
                pl.BlockSpec(memory_space=pl.ANY),   # W2 stays in HBM; manual DMA
            ]
            scratch_shapes = (
                pltpu.VMEM((V, V), w2.dtype),        # resident W2 buffer
                pltpu.SemaphoreType.DMA(()),         # its DMA semaphore
            )
            semantics = ("arbitrary",)               # step 0 must run first

        return pl.pallas_call(
            kernel,
            out_shape=out_shape,
            grid_spec=pltpu.PrefetchScalarGridSpec(
                num_scalar_prefetch=0,
                grid=(num_tiles,),
                in_specs=in_specs,
                out_specs=[
                    pl.BlockSpec((tb, V), row),
                    pl.BlockSpec((tb, V), row),
                ],
                scratch_shapes=scratch_shapes,
            ),
            compiler_params=pltpu.CompilerParams(
                dimension_semantics=semantics,
                vmem_limit_bytes=_vmem_limit_bytes(kind),
            ),
            cost_estimate=cost,
        )(xb, w1, t, w2)

    try:
        out, vec = call(True)
    except (pltpu.LoweringException, TypeError, ValueError,
            NotImplementedError, AttributeError) as e:
        # Narrow fallback: only spec/lowering rejections of Buffered(1) land
        # here; anything else propagates.  Warn so the slow path is visible.
        print("WARNING: single-buffered resident weights rejected "
              f"({type(e).__name__}); retrying with default double-buffering.",
              file=sys.stderr)
        out, vec = call(False)

    return out[:B], vec[:B]


# ---------------------------------------------------------------------------
# Reference + test harness
# ---------------------------------------------------------------------------

def reference_forward(x, p):
    """Plain-JAX f32 reference of the eval-mode PyTorch forward (unfolded BN)."""
    def enc(x, w, b, g, beta, m, v, eps=1e-5):
        y = x @ w.T + b
        return g * (y - m) / jnp.sqrt(v + eps) + beta

    h1 = enc(x, p["w1"], p["b1"], p["g1"], p["beta1"], p["m1"], p["v1"])
    h2 = enc(h1, p["w2"], p["b2"], p["g2"], p["beta2"], p["m2"], p["v2"])
    l2 = lambda a: a / jnp.maximum(
        jnp.sqrt(jnp.sum(a * a, axis=-1, keepdims=True)), 1e-12)
    return l2(h1), l2(h2)


def make_params(key, out_dim, vec_dim):
    ks = jax.random.split(key, 8)
    sc = 1.0 / jnp.sqrt(out_dim)
    sv = 1.0 / jnp.sqrt(vec_dim)
    return dict(
        # enc1: Linear(out_dim, vec_dim) + BN1(vec_dim)
        w1=jax.random.uniform(ks[0], (vec_dim, out_dim), jnp.float32, -sc, sc),
        b1=jax.random.uniform(ks[1], (vec_dim,), jnp.float32, -sc, sc),
        g1=1.0 + 0.1 * jax.random.normal(ks[2], (vec_dim,), jnp.float32),
        beta1=0.1 * jax.random.normal(ks[3], (vec_dim,), jnp.float32),
        m1=0.05 * jax.random.normal(ks[4], (vec_dim,), jnp.float32),
        v1=jnp.abs(1.0 + 0.1 * jax.random.normal(ks[5], (vec_dim,), jnp.float32)),
        # enc2: Linear(vec_dim, vec_dim) + BN1(vec_dim)  (out_dim == vec_dim)
        w2=jax.random.uniform(ks[6], (vec_dim, vec_dim), jnp.float32, -sv, sv),
        b2=jax.random.uniform(ks[7], (vec_dim,), jnp.float32, -sv, sv),
        g2=jnp.ones((vec_dim,), jnp.float32),
        beta2=jnp.zeros((vec_dim,), jnp.float32),
        m2=jnp.zeros((vec_dim,), jnp.float32),
        v2=jnp.ones((vec_dim,), jnp.float32),
    )


if __name__ == "__main__":
    # Small shapes consistent with the module (out_dim == vec_dim, default 2048),
    # shrunk to 256 for a quick run; batch = 8.
    B, OUT_DIM, VEC_DIM = 8, 256, 256

    key = jax.random.PRNGKey(0)
    kx, kp = jax.random.split(key)
    x = jax.random.normal(kx, (B, OUT_DIM), jnp.float32)   # data['x']
    params = make_params(kp, OUT_DIM, VEC_DIM)

    # One-time weight prep (fold BN scale into W, transpose, bf16 cast).
    prep = prepare_params(params)

    out, vec = autoenc_forward(x, prep)
    out, vec = jax.block_until_ready((out, vec))

    out_ref, vec_ref = reference_forward(x, params)
    # Tolerance covers bf16 matmul inputs (f32 accumulation) vs the f32 reference.
    assert jnp.allclose(out, out_ref, atol=1e-2, rtol=1e-2), "out mismatch"
    assert jnp.allclose(vec, vec_ref, atol=1e-2, rtol=1e-2), "vec mismatch"

    print("KERNEL_OK")
</pallas_src>

<mosaic_0001>
module attributes {stable_mosaic.version = 11 : i64} {
  func.func @autoenc_kernel_overlap(%arg0: i32, %arg1: memref<16x256xbf16, #tpu.memory_space<vmem>>, %arg2: memref<256x256xbf16, #tpu.memory_space<vmem>>, %arg3: memref<2x256xf32, #tpu.memory_space<vmem>>, %arg4: memref<256x256xbf16, #tpu.memory_space<any>>, %arg5: memref<16x256xf32, #tpu.memory_space<vmem>>, %arg6: memref<16x256xf32, #tpu.memory_space<vmem>>, %arg7: memref<256x256xbf16, #tpu.memory_space<vmem>>, %arg8: memref<!tpu.dma_semaphore, #tpu.memory_space<semaphore_mem>>) attributes {dimension_semantics = [#tpu.dimension_semantics<arbitrary>], iteration_bounds = array<i64: 1>, scalar_prefetch = 0 : i64, scratch_operands = 2 : i64, tpu.core_type = #tpu.core_type<tc>, window_params = [{transform_indices = @transform_0, window_bounds = array<i64: 16, 256>}, {pipeline_mode = #tpu.pipeline_mode<synchronous>, transform_indices = @transform_1, window_bounds = array<i64: 256, 256>}, {pipeline_mode = #tpu.pipeline_mode<synchronous>, transform_indices = @transform_2, window_bounds = array<i64: 2, 256>}, {}, {transform_indices = @transform_4, window_bounds = array<i64: 16, 256>}, {transform_indices = @transform_5, window_bounds = array<i64: 16, 256>}]} {
    %c0_i32 = arith.constant 0 : i32
    %0 = arith.cmpi eq, %arg0, %c0_i32 : i32
    %1 = arith.extui %0 : i1 to i32
    %c0_i32_0 = arith.constant 0 : i32
    %2 = arith.cmpi ne, %1, %c0_i32_0 : i32
    scf.if %2 {
      tpu.enqueue_dma source(%arg4 : memref<256x256xbf16, #tpu.memory_space<any>>) target(%arg7 : memref<256x256xbf16, #tpu.memory_space<vmem>>) target_semaphore(%arg8 : memref<!tpu.dma_semaphore, #tpu.memory_space<semaphore_mem>>)
    } else {
    }
    %c0 = arith.constant 0 : index
    %c0_1 = arith.constant 0 : index
    %3 = vector.load %arg1[%c0, %c0_1] : memref<16x256xbf16, #tpu.memory_space<vmem>>, vector<16x256xbf16>
    %c0_2 = arith.constant 0 : index
    %c0_3 = arith.constant 0 : index
    %4 = vector.load %arg2[%c0_2, %c0_3] : memref<256x256xbf16, #tpu.memory_space<vmem>>, vector<256x256xbf16>
    %cst = arith.constant dense<0.000000e+00> : vector<16x256xf32>
    %5 = tpu.matmul %3, %4, %cst {dimension_numbers = #tpu.dot_dimension_numbers<[1], [0], [0], [1], [0, 0, 1, 1], [], []>} : vector<16x256xbf16>, vector<256x256xbf16>, vector<16x256xf32> -> vector<16x256xf32>
    %c0_4 = arith.constant 0 : index
    %c0_5 = arith.constant 0 : index
    %6 = vector.load %arg3[%c0_4, %c0_5] : memref<2x256xf32, #tpu.memory_space<vmem>>, vector<1x256xf32>
    %7 = vector.broadcast %6 : vector<1x256xf32> to vector<16x256xf32>
    %8 = arith.addf %5, %7 : vector<16x256xf32>
    %9 = arith.mulf %8, %8 : vector<16x256xf32>
    %cst_6 = arith.constant dense<0.000000e+00> : vector<16xf32>
    %10 = vector.multi_reduction <add>, %9, %cst_6 [1] : vector<16x256xf32> to vector<16xf32>
    %11 = vector.shape_cast %10 : vector<16xf32> to vector<16x1xf32>
    %cst_7 = arith.constant 1.000000e-24 : f32
    %12 = vector.broadcast %cst_7 : f32 to vector<16x1xf32>
    %13 = arith.maximumf %11, %12 : vector<16x1xf32>
    %14 = math.rsqrt %13 : vector<16x1xf32>
    %15 = vector.broadcast %14 : vector<16x1xf32> to vector<16x256xf32>
    %16 = arith.mulf %8, %15 : vector<16x256xf32>
    %c0_8 = arith.constant 0 : index
    %c0_9 = arith.constant 0 : index
    %17 = vector.load %arg5[%c0_8, %c0_9] : memref<16x256xf32, #tpu.memory_space<vmem>>, vector<16x256xf32>
    tpu.vector_store %arg5[%c0_8, %c0_9], %16 {strides = array<i32>} : memref<16x256xf32, #tpu.memory_space<vmem>>, vector<16x256xf32>,
    %18 = arith.extui %0 : i1 to i32
    %c0_i32_10 = arith.constant 0 : i32
    %19 = arith.cmpi ne, %18, %c0_i32_10 : i32
    scf.if %19 {
      tpu.wait_dma2 semaphore(%arg8 : memref<!tpu.dma_semaphore, #tpu.memory_space<semaphore_mem>>) src(%arg4 : memref<256x256xbf16, #tpu.memory_space<any>>) dst(%arg7 : memref<256x256xbf16, #tpu.memory_space<vmem>>)
    } else {
    }
    %20 = arith.truncf %8 : vector<16x256xf32> to vector<16x256xbf16>
    %c0_11 = arith.constant 0 : index
    %c0_12 = arith.constant 0 : index
    %21 = vector.load %arg7[%c0_11, %c0_12] : memref<256x256xbf16, #tpu.memory_space<vmem>>, vector<256x256xbf16>
    %cst_13 = arith.constant dense<0.000000e+00> : vector<16x256xf32>
    %22 = tpu.matmul %20, %21, %cst_13 {dimension_numbers = #tpu.dot_dimension_numbers<[1], [0], [0], [1], [0, 0, 1, 1], [], []>} : vector<16x256xbf16>, vector<256x256xbf16>, vector<16x256xf32> -> vector<16x256xf32>
    %c1 = arith.constant 1 : index
    %c0_14 = arith.constant 0 : index
    %23 = vector.load %arg3[%c1, %c0_14] : memref<2x256xf32, #tpu.memory_space<vmem>>, vector<1x256xf32>
    %24 = vector.broadcast %23 : vector<1x256xf32> to vector<16x256xf32>
    %25 = arith.addf %22, %24 : vector<16x256xf32>
    %26 = arith.mulf %25, %25 : vector<16x256xf32>
    %cst_15 = arith.constant dense<0.000000e+00> : vector<16xf32>
    %27 = vector.multi_reduction <add>, %26, %cst_15 [1] : vector<16x256xf32> to vector<16xf32>
    %28 = vector.shape_cast %27 : vector<16xf32> to vector<16x1xf32>
    %cst_16 = arith.constant 1.000000e-24 : f32
    %29 = vector.broadcast %cst_16 : f32 to vector<16x1xf32>
    %30 = arith.maximumf %28, %29 : vector<16x1xf32>
    %31 = math.rsqrt %30 : vector<16x1xf32>
    %32 = vector.broadcast %31 : vector<16x1xf32> to vector<16x256xf32>
    %33 = arith.mulf %25, %32 : vector<16x256xf32>
    %c0_17 = arith.constant 0 : index
    %c0_18 = arith.constant 0 : index
    %34 = vector.load %arg6[%c0_17, %c0_18] : memref<16x256xf32, #tpu.memory_space<vmem>>, vector<16x256xf32>
    tpu.vector_store %arg6[%c0_17, %c0_18], %33 {strides = array<i32>} : memref<16x256xf32, #tpu.memory_space<vmem>>, vector<16x256xf32>,
    return
  }
  func.func @transform_0(%arg0: i32) -> (i32, i32) {
    %c0_i32 = arith.constant 0 : i32
    %c0_i32_0 = arith.constant 0 : i32
    return %arg0, %c0_i32 : i32, i32
  }
  func.func @transform_1(%arg0: i32) -> (i32, i32) {
    %c0_i32 = arith.constant 0 : i32
    %c0_i32_0 = arith.constant 0 : i32
    %c0_i32_1 = arith.constant 0 : i32
    return %c0_i32, %c0_i32_0 : i32, i32
  }
  func.func @transform_2(%arg0: i32) -> (i32, i32) {
    %c0_i32 = arith.constant 0 : i32
    %c0_i32_0 = arith.constant 0 : i32
    %c0_i32_1 = arith.constant 0 : i32
    return %c0_i32, %c0_i32_0 : i32, i32
  }
  func.func @transform_4(%arg0: i32) -> (i32, i32) {
    %c0_i32 = arith.constant 0 : i32
    %c0_i32_0 = arith.constant 0 : i32
    return %arg0, %c0_i32 : i32, i32
  }
  func.func @transform_5(%arg0: i32) -> (i32, i32) {
    %c0_i32 = arith.constant 0 : i32
    %c0_i32_0 = arith.constant 0 : i32
    return %arg0, %c0_i32 : i32, i32
  }
}

</mosaic_0001>

<bundles_post_ra>
// kernel: tpu_custom_call.1
= control target key start
LH: loop header
LB: loop body
LE: loop exit
PB: predicated region body
PF: predicated region fallthrough
CT: control target
= control target key end

     0   :  { %11 = vsyncpa [#allocation5], 0  ;;  %s917_s0 = inlined_call_operand.hbm [shape: bf16[16,256], index: 0, kind: input, shape index: {}]   ;;  %s918_s1 = inlined_call_operand.hbm [shape: bf16[256,256], index: 1, kind: input, shape index: {}]   ;;  %s919_s2 = inlined_call_operand.hbm [shape: f32[2,256], index: 2, kind: input, shape index: {}]   ;;  %s920_s3 = inlined_call_operand.hbm [shape: bf16[256,256], index: 3, kind: input, shape index: {}]   ;;  %s921_s4 = inlined_call_operand.hbm [shape: f32[16,256], index: 4, kind: output, shape index: {0}]   ;;  %s922_s5 = inlined_call_operand.hbm [shape: f32[16,256], index: 5, kind: output, shape index: {1}]  }
   0x1   :  { %12 = vsyncpa [#allocation8], 0 }
   0x2   :  { %13 = vsyncpa [#allocation6], 0 }
   0x3   :  { %14 = vsyncpa [#allocation12], 0  ;;  %s770_s18 = smov [#allocation7]   ;;  %s771_s20 = smov [#allocation4]  }
   0x4   :  { %s32_s19 = sshll.u32 %s770_s18, 4  ;;  %s20_s21 = sshll.u32 %s771_s20, 4  ;;  %s33_s19 = int_to_ptr.vmem [resolvable:$true] %s32_s19  ;;  %s817_s21 = int_to_ptr.vmem [resolvable:$true] %s20_s21 }
   0x5   :  { %s650_s24 = scalar_lea.hbm %s918_s1, 4096 }
   0x6   :  { %p651_p0 = scmp.ne.s32.totalorder %s918_s1, %s650_s24  ;;  %p654_p1 = scmp.lt.u32.totalorder %s650_s24, %s918_s1 }
   0x8   :  { %p656_p2 = pnand %p654_p1, %p651_p0 }
   0xa   :  { %659 = shalt.err (!%p656_p2)
}
   0xb   :  { %s660_s29 = scalar_lea.vmem %s33_s19, 4096  ;;  %p665_p4 = scmp.lt.s32.totalorder %s33_s19, %s33_s19 }
   0xc   :  { %p661_p3 = scmp.ne.s32.totalorder %s33_s19, %s660_s29  ;;  %p666_p5 = scmp.lt.s32.totalorder %s660_s29, %s660_s29 }
   0xe   :  { %p667_p6 = por %p666_p5, %p665_p4 }
  0x10   :  { %p668_p7 = pnand %p667_p6, %p661_p3 }
  0x12   :  { %671 = shalt.err (!%p668_p7)
}
  0x13   :  { %s772_s30 = smov 128   ;;  %s773_s6 = smov 8  }
  0x14   :  { %38 = dma.hbm_to_vmem [thread:$0]  %s918_s1, 4096, %s33_s19, [#allocation8], %s772_s30, %s772_s30, %s773_s6  }
  0x15   :  { %s672_s11 = scalar_lea.hbm %s917_s0, 256 }
  0x16   :  { %p673_p8 = scmp.ne.s32.totalorder %s917_s0, %s672_s11  ;;  %p676_p9 = scmp.lt.u32.totalorder %s672_s11, %s917_s0 }
  0x18   :  { %p678_p10 = pnand %p676_p9, %p673_p8 }
  0x1a   :  { %681 = shalt.err (!%p678_p10)
}
  0x1b   :  { %s682_s16 = scalar_lea.vmem %s817_s21, 256  ;;  %p687_p12 = scmp.lt.s32.totalorder %s817_s21, %s817_s21 }
  0x1c   :  { %p683_p11 = scmp.ne.s32.totalorder %s817_s21, %s682_s16  ;;  %p688_p13 = scmp.lt.s32.totalorder %s682_s16, %s682_s16 }
  0x1e   :  { %p689_p0 = por %p688_p13, %p687_p12 }
  0x20   :  { %p690_p1 = pnand %p689_p0, %p683_p11 }
  0x22   :  { %693 = shalt.err (!%p690_p1)
}
  0x23   :  { %26 = dma.hbm_to_vmem [thread:$0]  %s917_s0, 256, %s817_s21, [#allocation5], %s772_s30, %s772_s30, %s773_s6  }
  0x24   :  { %s774_s18 = smov [#allocation9]   ;;  %s694_s23 = scalar_lea.hbm %s919_s2, 64 }
  0x25   :  { %s45_s19 = sshll.u32 %s774_s18, 4  ;;  %p695_p2 = scmp.ne.s32.totalorder %s919_s2, %s694_s23  ;;  %s46_s19 = int_to_ptr.vmem [resolvable:$true] %s45_s19 }
  0x26   :  { %p698_p3 = scmp.lt.u32.totalorder %s694_s23, %s919_s2 }
  0x28   :  { %p700_p4 = pnand %p698_p3, %p695_p2 }
  0x2a   :  { %703 = shalt.err (!%p700_p4)
}
  0x2b   :  { %s704_s28 = scalar_lea.vmem %s46_s19, 64  ;;  %p709_p6 = scmp.lt.s32.totalorder %s46_s19, %s46_s19 }
  0x2c   :  { %p705_p5 = scmp.ne.s32.totalorder %s46_s19, %s704_s28  ;;  %p710_p7 = scmp.lt.s32.totalorder %s704_s28, %s704_s28 }
  0x2e   :  { %p711_p8 = por %p710_p7, %p709_p6 }
  0x30   :  { %p712_p9 = pnand %p711_p8, %p705_p5 }
  0x32   :  { %715 = shalt.err (!%p712_p9)
}
  0x33   :  { %48 = dma.hbm_to_vmem [thread:$0]  %s919_s2, 64, %s46_s19, [#allocation8]  }
  0x34   :  { %760 = dma.done.wait [#allocation5], 256  }
  0x35   :  { %761 = vsyncadd [#allocation5], 4294967040 }
  0x36   :  { %762 = dma.done.wait [#allocation8], 4160  }
  0x37   :  { %763 = vsyncadd [#allocation8], 4294963136 }
  0x38   :  { %s66_s29 = sld [smem:[#allocation0]]   ;;  %s775_s30 = smov [#allocation2]   ;;  %v133_v34 = vlaneseq }
  0x39   :  { %s74_s6 = sshll.u32 %s775_s30, 4  ;;  %s776_s7 = smov 256   ;;  %s75_s6 = int_to_ptr.vmem [resolvable:$true] %s74_s6 }
  0x3a   :  { %78 = sst [smem:[#allocation14]] %s776_s7  ;;  %s777_s8 = smov 2   ;;  %v863_v35 = vshrl.u32 %v133_v34, 7 }
  0x3b   :  { %80 = sst [smem:[#allocation14 + $0x1]] %s776_s7  ;;  %s778_s9 = smov 64  }
  0x3c   :  { %82 = sst [smem:[#allocation14 + $0x2]] %s777_s8  ;;  %s779_s11 = smov 128   ;;  %v135_v36 = vsub.s32 0, %v863_v35  ;;  %v139_v38 = vsub.s32 1, %v863_v35 }
  0x3d   :  { %84 = sst [smem:[#allocation14 + $0x3]] %s778_s9  ;;  %s780_s2 = smov 4  }
  0x3e   :  { %s537_s10 = sshll.u32 %s66_s29, 26  ;;  %86 = sst [smem:[#allocation14 + $0x4]] %s779_s11 }
  0x3f   :  { %s538_s12 = sadd.s32 134217728, %s537_s10  ;;  %88 = sst [smem:[#allocation14 + $0x5]] %s777_s8 }
  0x40   :  { %90 = sst [smem:[#allocation14 + $0x6]] %s779_s11  ;;  %s781_s13 = smov [#allocation3]  }
  0x41   :  { %92 = sst [smem:[#allocation14 + $0x7]] %s778_s9  ;;  %s782_s14 = smov [#allocation13]  }
  0x42   :  { %94 = sst [smem:[#allocation14 + $0x8]] %s780_s2 }
  0x43   :  { %96 = dma.general %s920_s3, 4096, %s75_s6, %s781_s13, %s782_s14, [#allocation14], %s538_s12, 0  }
  0x44   :  { %v591_v0 = vld [vmem:[#allocation7 + $0x4] ss:$8 sps:$4 sm:$0xff]   ;;  %v593_v1 = vld [vmem:[#allocation7] ss:$8 sps:$4 sm:$0xff]   ;;  %v594_v2 = vld [vmem:[#allocation7 + $0x14] ss:$8 sps:$4 sm:$0xff]  }
  0x45   :  { %313 = vmatprep.subr.bf16.mxu0 %v591_v0  ;;  %v596_v3 = vld [vmem:[#allocation7 + $0x10] ss:$8 sps:$4 sm:$0xff]   ;;  %v597_v4 = vld [vmem:[#allocation7 + $0x24] ss:$8 sps:$4 sm:$0xff]   ;;  %v599_v5 = vld [vmem:[#allocation7 + $0x20] ss:$8 sps:$4 sm:$0xff]  }
  0x46   :  { %314 = vmatpush1.bf16.msra.mxu0 %v593_v1  ;;  %v600_v6 = vld [vmem:[#allocation7 + $0x34] ss:$8 sps:$4 sm:$0xff]   ;;  %v602_v7 = vld [vmem:[#allocation7 + $0x30] ss:$8 sps:$4 sm:$0xff]   ;;  %v603_v8 = vld [vmem:[#allocation7 + $0x44] ss:$8 sps:$4 sm:$0xff]  }
  0x47   :  { %315 = vmatprep.subr.bf16.mxu0 %v594_v2  ;;  %v605_v9 = vld [vmem:[#allocation7 + $0x40] ss:$8 sps:$4 sm:$0xff]   ;;  %v606_v10 = vld [vmem:[#allocation7 + $0x54] ss:$8 sps:$4 sm:$0xff]   ;;  %v608_v11 = vld [vmem:[#allocation7 + $0x50] ss:$8 sps:$4 sm:$0xff]  }
  0x48   :  { %v609_v12 = vld [vmem:[#allocation7 + $0x64] ss:$8 sps:$4 sm:$0xff]   ;;  %v641_v13 = vld [vmem:[#allocation4 + $0x4] ss:$8 sps:$4 sm:$0xff]   ;;  %v611_v14 = vld [vmem:[#allocation7 + $0x60] ss:$8 sps:$4 sm:$0xff]  }
  0x49   :  { %v612_v15 = vld [vmem:[#allocation7 + $0x74] ss:$8 sps:$4 sm:$0xff]   ;;  %345 = vmatprep.mubr.bf16.mxu0 %v641_v13  ;;  %v614_v16 = vld [vmem:[#allocation7 + $0x70] ss:$8 sps:$4 sm:$0xff]   ;;  %v615_v17 = vld [vmem:[#allocation7 + $0x84] ss:$8 sps:$4 sm:$0xff]  }
  0x4a   :  { %316 = vmatpush1.bf16.msra.mxu0 %v596_v3  ;;  %v617_v18 = vld [vmem:[#allocation7 + $0x80] ss:$8 sps:$4 sm:$0xff]   ;;  %v618_v19 = vld [vmem:[#allocation7 + $0x94] ss:$8 sps:$4 sm:$0xff]   ;;  %v620_v20 = vld [vmem:[#allocation7 + $0x90] ss:$8 sps:$4 sm:$0xff]  }
  0x4b   :  { %317 = vmatprep.subr.bf16.mxu0 %v597_v4  ;;  %v621_v21 = vld [vmem:[#allocation7 + $0xa4] ss:$8 sps:$4 sm:$0xff]   ;;  %v623_v22 = vld [vmem:[#allocation7 + $0xa0] ss:$8 sps:$4 sm:$0xff]   ;;  %v624_v23 = vld [vmem:[#allocation7 + $0xb4] ss:$8 sps:$4 sm:$0xff]  }
  0x4c   :  { %v626_v24 = vld [vmem:[#allocation7 + $0xb0] ss:$8 sps:$4 sm:$0xff]   ;;  %v627_v25 = vld [vmem:[#allocation7 + $0xc4] ss:$8 sps:$4 sm:$0xff]   ;;  %v629_v26 = vld [vmem:[#allocation7 + $0xc0] ss:$8 sps:$4 sm:$0xff]  }
  0x4d   :  { %v630_v27 = vld [vmem:[#allocation7 + $0xd4] ss:$8 sps:$4 sm:$0xff]   ;;  %v632_v28 = vld [vmem:[#allocation7 + $0xd0] ss:$8 sps:$4 sm:$0xff]   ;;  %v633_v29 = vld [vmem:[#allocation7 + $0xe4] ss:$8 sps:$4 sm:$0xff]  }
  0x4e   :  { %318 = vmatpush1.bf16.msra.mxu0 %v599_v5  ;;  %v635_v30 = vld [vmem:[#allocation7 + $0xe0] ss:$8 sps:$4 sm:$0xff]   ;;  %v636_v31 = vld [vmem:[#allocation7 + $0xf4] ss:$8 sps:$4 sm:$0xff]   ;;  %v638_v32 = vld [vmem:[#allocation7 + $0xf0] ss:$8 sps:$4 sm:$0xff]  }
  0x4f   :  { %319 = vmatprep.subr.bf16.mxu0 %v600_v6  ;;  %v639_v33 = vld [vmem:[#allocation4] ss:$8 sps:$4 sm:$0xff]   ;;  %v131_v37 = vld [vmem:[#allocation9] ss:$2 sm:$0x3] }
  0x50   :  { %v136_v39 = vrot.slane %v131_v37, %v135_v36  ;;  %v140_v40 = vrot.slane %v131_v37, %v139_v38 }
  0x52   :  { %320 = vmatpush1.bf16.msra.mxu0 %v602_v7 }
  0x53   :  { %321 = vmatprep.subr.bf16.mxu0 %v603_v8 }
  0x56   :  { %322 = vmatpush1.bf16.msra.mxu0 %v605_v9 }
  0x57   :  { %323 = vmatprep.subr.bf16.mxu0 %v606_v10 }
  0x5a   :  { %324 = vmatpush1.bf16.msra.mxu0 %v608_v11 }
  0x5b   :  { %325 = vmatprep.subr.bf16.mxu0 %v609_v12 }
  0x5e   :  { %326 = vmatpush1.bf16.msra.mxu0 %v611_v14 }
  0x5f   :  { %327 = vmatprep.subr.bf16.mxu0 %v612_v15 }
  0x62   :  { %328 = vmatpush1.bf16.msra.mxu0 %v614_v16 }
  0x63   :  { %329 = vmatprep.subr.bf16.mxu0 %v615_v17 }
  0x66   :  { %330 = vmatpush1.bf16.msra.mxu0 %v617_v18 }
  0x67   :  { %331 = vmatprep.subr.bf16.mxu0 %v618_v19 }
  0x6a   :  { %332 = vmatpush1.bf16.msra.mxu0 %v620_v20 }
  0x6b   :  { %333 = vmatprep.subr.bf16.mxu0 %v621_v21 }
  0x6e   :  { %334 = vmatpush1.bf16.msra.mxu0 %v623_v22 }
  0x6f   :  { %335 = vmatprep.subr.bf16.mxu0 %v624_v23 }
  0x72   :  { %336 = vmatpush1.bf16.msra.mxu0 %v626_v24 }
  0x73   :  { %337 = vmatprep.subr.bf16.mxu0 %v627_v25 }
  0x76   :  { %338 = vmatpush1.bf16.msra.mxu0 %v629_v26 }
  0x77   :  { %339 = vmatprep.subr.bf16.mxu0 %v630_v27 }
  0x7a   :  { %340 = vmatpush1.bf16.msra.mxu0 %v632_v28 }
  0x7b   :  { %341 = vmatprep.subr.bf16.mxu0 %v633_v29 }
  0x7e   :  { %342 = vmatpush1.bf16.msra.mxu0 %v635_v30 }
  0x7f   :  { %343 = vmatprep.subr.bf16.mxu0 %v636_v31 }
  0x82   :  { %344 = vmatpush1.bf16.msra.mxu0 %v638_v32 }
  0x85   :  { %346 = vmatmul.mubr.bf16.vlgmr.msra.gmra.mrb[0].mxu0 %v639_v33 }
 0x158   :  { %v347_v41 = vpop.f32.mrb[0].mxu0 }
 0x159   :  { %v871_v42 = vadd.f32 %v347_v41, %v136_v39  ;;  %v349_v43 = vpop.f32.mrb[1].mxu0 }
 0x15a   :  { %v350_v44 = vadd.f32 %v349_v43, %v140_v40  ;;  %v351_v45 = vpop.f32.mrb[2].mxu0 }
 0x15b   :  { %v873_v46 = vadd.f32 %v351_v45, %v136_v39  ;;  %v353_v47 = vpop.f32.mrb[3].mxu0  ;;  %v356_v48 = vmul.f32 %v871_v42, %v871_v42 }
 0x15c   :  { %v354_v49 = vadd.f32 %v353_v47, %v140_v40  ;;  %v357_v50 = vmul.f32 %v350_v44, %v350_v44 }
 0x15d   :  { %v358_v51 = vmul.f32 %v873_v46, %v873_v46 }
 0x15e   :  { %v359_v52 = vmul.f32 %v354_v49, %v354_v49  ;;  %v360_v53 = vadd.f32 %v357_v50, %v356_v48 }
 0x160   :  { %361 = vadd.xlane.f32.xlu0 %v360_v53  ;;  %v363_v54 = vadd.f32 %v359_v52, %v358_v51 }
 0x164   :  { %364 = vadd.xlane.f32.xlu0 %v363_v54 }
 0x1ed   :  { %v362_v55 = vpop.xlane.xlu0 %361 }
 0x1ee   :  { %v366_v56 = vmax.f32 %v362_v55, 1e-24 }
 0x1f0   :  { %642 = vrsqrt.f32 %v366_v56 }
 0x1f1   :  { %v365_v57 = vpop.xlane.xlu0 %364 }
 0x1f2   :  { %v367_v58 = vmax.f32 %v365_v57, 1e-24 }
 0x1f4   :  { %644 = vrsqrt.f32 %v367_v58 }
 0x1fa   :  { %v643_v59 = vpop.eup %642 }
 0x1fb   :  { %v370_v60 = vmul.f32 %v643_v59, %v871_v42  ;;  %v371_v61 = vmul.f32 %v643_v59, %v350_v44 }
 0x1fd   :  { %374 = vst [vmem:[#allocation10] sm:$0xff] %v370_v60  ;;  %375 = vst [vmem:[#allocation10 + $0x8] sm:$0xff] %v371_v61 }
 0x1fe   :  { %v645_v62 = vpop.eup %644 }
 0x1ff   :  { %v372_v63 = vmul.f32 %v645_v62, %v873_v46  ;;  %v373_v0 = vmul.f32 %v645_v62, %v354_v49 }
 0x201   :  { %376 = vst [vmem:[#allocation10 + $0x10] sm:$0xff] %v372_v63  ;;  %377 = vst [vmem:[#allocation10 + $0x18] sm:$0xff] %v373_v0 }
 0x202   :  { %764 = dma.done.wait [#allocation3], 4096 }
 0x203   :  { %765 = vsyncadd [#allocation3], 4294963200  ;;  %v386_v1 = vpack.c.bf16 %v354_v49, %v350_v44  ;;  %v388_v2 = vld [vmem:[#allocation2 + $0x8] sm:$0xff]  ;;  %v387_v3 = vld [vmem:[#allocation2] sm:$0xff]  ;;  %v385_v34 = vpack.c.bf16 %v873_v46, %v871_v42  ;;  %s783_s3 = smov [#allocation10]  }
 0x204   :  { %v390_v4 = vld [vmem:[#allocation2 + $0x18] sm:$0xff]  ;;  %432 = vmatprep.subr.bf16.mxu1 %v388_v2  ;;  %v389_v5 = vld [vmem:[#allocation2 + $0x10] sm:$0xff]  ;;  %v392_v6 = vld [vmem:[#allocation2 + $0x28] sm:$0xff]  ;;  %s502_s1 = sshll.u32 %s783_s3, 4  ;;  %s503_s1 = int_to_ptr.vmem [resolvable:$true] %s502_s1 }
 0x205   :  { %464 = vmatprep.mubr.bf16.mxu1 %v386_v1  ;;  %433 = vmatpush1.bf16.msra.mxu1 %v387_v3  ;;  %v391_v7 = vld [vmem:[#allocation2 + $0x20] sm:$0xff]  ;;  %v394_v8 = vld [vmem:[#allocation2 + $0x38] sm:$0xff]  ;;  %v393_v9 = vld [vmem:[#allocation2 + $0x30] sm:$0xff]  ;;  %s716_s17 = scalar_lea.vmem %s503_s1, 512  ;;  %p721_p11 = scmp.lt.s32.totalorder %s503_s1, %s503_s1 }
 0x206   :  { %434 = vmatprep.subr.bf16.mxu1 %v390_v4  ;;  %v396_v10 = vld [vmem:[#allocation2 + $0x48] sm:$0xff]  ;;  %v395_v11 = vld [vmem:[#allocation2 + $0x40] sm:$0xff]  ;;  %v398_v12 = vld [vmem:[#allocation2 + $0x58] sm:$0xff]  ;;  %p717_p10 = scmp.ne.s32.totalorder %s503_s1, %s716_s17  ;;  %p722_p12 = scmp.lt.s32.totalorder %s716_s17, %s716_s17 }
 0x207   :  { %v397_v13 = vld [vmem:[#allocation2 + $0x50] sm:$0xff]  ;;  %v400_v14 = vld [vmem:[#allocation2 + $0x68] sm:$0xff]  ;;  %v399_v15 = vld [vmem:[#allocation2 + $0x60] sm:$0xff] }
 0x208   :  { %v402_v16 = vld [vmem:[#allocation2 + $0x78] sm:$0xff]  ;;  %v401_v17 = vld [vmem:[#allocation2 + $0x70] sm:$0xff]  ;;  %v404_v18 = vld [vmem:[#allocation2 + $0x88] sm:$0xff]  ;;  %p723_p13 = por %p722_p12, %p721_p11 }
 0x209   :  { %435 = vmatpush1.bf16.msra.mxu1 %v389_v5  ;;  %v403_v19 = vld [vmem:[#allocation2 + $0x80] sm:$0xff]  ;;  %v406_v20 = vld [vmem:[#allocation2 + $0x98] sm:$0xff]  ;;  %v405_v21 = vld [vmem:[#allocation2 + $0x90] sm:$0xff] }
 0x20a   :  { %436 = vmatprep.subr.bf16.mxu1 %v392_v6  ;;  %v408_v22 = vld [vmem:[#allocation2 + $0xa8] sm:$0xff]  ;;  %v407_v23 = vld [vmem:[#allocation2 + $0xa0] sm:$0xff]  ;;  %v410_v24 = vld [vmem:[#allocation2 + $0xb8] sm:$0xff]  ;;  %p724_p0 = pnand %p723_p13, %p717_p10 }
 0x20b   :  { %v409_v25 = vld [vmem:[#allocation2 + $0xb0] sm:$0xff]  ;;  %v412_v26 = vld [vmem:[#allocation2 + $0xc8] sm:$0xff]  ;;  %v411_v27 = vld [vmem:[#allocation2 + $0xc0] sm:$0xff] }
 0x20c   :  { %v414_v28 = vld [vmem:[#allocation2 + $0xd8] sm:$0xff]  ;;  %v413_v29 = vld [vmem:[#allocation2 + $0xd0] sm:$0xff]  ;;  %v416_v30 = vld [vmem:[#allocation2 + $0xe8] sm:$0xff] }
 0x20d   :  { %437 = vmatpush1.bf16.msra.mxu1 %v391_v7  ;;  %v415_v31 = vld [vmem:[#allocation2 + $0xe0] sm:$0xff]  ;;  %v418_v32 = vld [vmem:[#allocation2 + $0xf8] sm:$0xff]  ;;  %v417_v33 = vld [vmem:[#allocation2 + $0xf0] sm:$0xff] }
 0x20e   :  { %438 = vmatprep.subr.bf16.mxu1 %v394_v8  ;;  %v420_v37 = vld [vmem:[#allocation9 + $0x1] ss:$2 sm:$0x3] }
 0x20f   :  { %v425_v39 = vrot.slane %v420_v37, %v135_v36  ;;  %v429_v40 = vrot.slane %v420_v37, %v139_v38 }
 0x211   :  { %439 = vmatpush1.bf16.msra.mxu1 %v393_v9 }
 0x212   :  { %440 = vmatprep.subr.bf16.mxu1 %v396_v10 }
 0x215   :  { %441 = vmatpush1.bf16.msra.mxu1 %v395_v11 }
 0x216   :  { %442 = vmatprep.subr.bf16.mxu1 %v398_v12 }
 0x219   :  { %443 = vmatpush1.bf16.msra.mxu1 %v397_v13 }
 0x21a   :  { %444 = vmatprep.subr.bf16.mxu1 %v400_v14 }
 0x21d   :  { %445 = vmatpush1.bf16.msra.mxu1 %v399_v15 }
 0x21e   :  { %446 = vmatprep.subr.bf16.mxu1 %v402_v16 }
 0x221   :  { %447 = vmatpush1.bf16.msra.mxu1 %v401_v17 }
 0x222   :  { %448 = vmatprep.subr.bf16.mxu1 %v404_v18 }
 0x225   :  { %449 = vmatpush1.bf16.msra.mxu1 %v403_v19 }
 0x226   :  { %450 = vmatprep.subr.bf16.mxu1 %v406_v20 }
 0x229   :  { %451 = vmatpush1.bf16.msra.mxu1 %v405_v21 }
 0x22a   :  { %452 = vmatprep.subr.bf16.mxu1 %v408_v22 }
 0x22d   :  { %453 = vmatpush1.bf16.msra.mxu1 %v407_v23 }
 0x22e   :  { %454 = vmatprep.subr.bf16.mxu1 %v410_v24 }
 0x231   :  { %455 = vmatpush1.bf16.msra.mxu1 %v409_v25 }
 0x232   :  { %456 = vmatprep.subr.bf16.mxu1 %v412_v26 }
 0x235   :  { %457 = vmatpush1.bf16.msra.mxu1 %v411_v27 }
 0x236   :  { %458 = vmatprep.subr.bf16.mxu1 %v414_v28 }
 0x239   :  { %459 = vmatpush1.bf16.msra.mxu1 %v413_v29 }
 0x23a   :  { %460 = vmatprep.subr.bf16.mxu1 %v416_v30 }
 0x23d   :  { %461 = vmatpush1.bf16.msra.mxu1 %v415_v31 }
 0x23e   :  { %462 = vmatprep.subr.bf16.mxu1 %v418_v32 }
 0x241   :  { %463 = vmatpush1.bf16.msra.mxu1 %v417_v33 }
 0x244   :  { %465 = vmatmul.mubr.bf16.vlgmr.msra.gmra.mrb[0].mxu1 %v385_v34 }
 0x317   :  { %v466_v41 = vpop.f32.mrb[0].mxu1 }
 0x318   :  { %v467_v43 = vadd.f32 %v466_v41, %v425_v39  ;;  %v468_v44 = vpop.f32.mrb[1].mxu1 }
 0x319   :  { %v469_v45 = vadd.f32 %v468_v44, %v429_v40  ;;  %v470_v47 = vpop.f32.mrb[2].mxu1 }
 0x31a   :  { %v471_v48 = vadd.f32 %v470_v47, %v425_v39  ;;  %v472_v49 = vpop.f32.mrb[3].mxu1  ;;  %v475_v50 = vmul.f32 %v467_v43, %v467_v43 }
 0x31b   :  { %v473_v51 = vadd.f32 %v472_v49, %v429_v40  ;;  %v476_v52 = vmul.f32 %v469_v45, %v469_v45 }
 0x31c   :  { %v477_v42 = vmul.f32 %v471_v48, %v471_v48 }
 0x31d   :  { %v478_v46 = vmul.f32 %v473_v51, %v473_v51  ;;  %v479_v53 = vadd.f32 %v476_v52, %v475_v50 }
 0x31f   :  { %480 = vadd.xlane.f32.xlu0 %v479_v53  ;;  %v482_v54 = vadd.f32 %v478_v46, %v477_v42 }
 0x323   :  { %483 = vadd.xlane.f32.xlu0 %v482_v54 }
 0x324   :  { %727 = shalt.err (!%p724_p0)
}
 0x325   :  { %s728_s20 = scalar_lea.hbm %s921_s4, 512 }
 0x326   :  { %p729_p1 = scmp.ne.s32.totalorder %s921_s4, %s728_s20  ;;  %p732_p2 = scmp.lt.u32.totalorder %s728_s20, %s921_s4 }
 0x328   :  { %p734_p3 = pnand %p732_p2, %p729_p1 }
 0x32a   :  { %737 = shalt.err (!%p734_p3)
}
 0x32b   :  { %s784_s26 = smov 256   ;;  %s785_s27 = smov 16  }
 0x32c   :  { %508 = dma.vmem_to_hbm [thread:$0]  %s503_s1, 512, %s921_s4, [#allocation6], %s784_s26, %s784_s26, %s785_s27  }
 0x32d   :  { %s786_s21 = smov [#allocation11]  }
 0x32e   :  { %s514_s29 = sshll.u32 %s786_s21, 4  ;;  %s515_s29 = int_to_ptr.vmem [resolvable:$true] %s514_s29 }
 0x32f   :  { %s738_s4 = scalar_lea.vmem %s515_s29, 512  ;;  %p743_p5 = scmp.lt.s32.totalorder %s515_s29, %s515_s29 }
 0x330   :  { %p739_p4 = scmp.ne.s32.totalorder %s515_s29, %s738_s4  ;;  %p744_p6 = scmp.lt.s32.totalorder %s738_s4, %s738_s4 }
 0x332   :  { %p745_p7 = por %p744_p6, %p743_p5 }
 0x334   :  { %p746_p8 = pnand %p745_p7, %p739_p4 }
 0x3ac   :  { %v481_v35 = vpop.xlane.xlu0 %480 }
 0x3ad   :  { %v485_v36 = vmax.f32 %v481_v35, 1e-24 }
 0x3af   :  { %646 = vrsqrt.f32 %v485_v36 }
 0x3b0   :  { %v484_v38 = vpop.xlane.xlu0 %483 }
 0x3b1   :  { %v486_v55 = vmax.f32 %v484_v38, 1e-24 }
 0x3b3   :  { %648 = vrsqrt.f32 %v486_v55 }
 0x3b9   :  { %v647_v56 = vpop.eup %646 }
 0x3ba   :  { %v489_v57 = vmul.f32 %v647_v56, %v467_v43  ;;  %v490_v58 = vmul.f32 %v647_v56, %v469_v45 }
 0x3bc   :  { %493 = vst [vmem:[#allocation11] sm:$0xff] %v489_v57  ;;  %494 = vst [vmem:[#allocation11 + $0x8] sm:$0xff] %v490_v58 }
 0x3bd   :  { %v649_v59 = vpop.eup %648 }
 0x3be   :  { %v491_v60 = vmul.f32 %v649_v59, %v471_v48  ;;  %v492_v61 = vmul.f32 %v649_v59, %v473_v51 }
 0x3c0   :  { %495 = vst [vmem:[#allocation11 + $0x10] sm:$0xff] %v491_v60  ;;  %496 = vst [vmem:[#allocation11 + $0x18] sm:$0xff] %v492_v61 }
 0x3c1   :  { %749 = shalt.err (!%p746_p8)
}
 0x3c2   :  { %s750_s7 = scalar_lea.hbm %s922_s5, 512 }
 0x3c3   :  { %p751_p9 = scmp.ne.s32.totalorder %s922_s5, %s750_s7  ;;  %p754_p10 = scmp.lt.u32.totalorder %s750_s7, %s922_s5 }
 0x3c5   :  { %p756_p11 = pnand %p754_p10, %p751_p9 }
 0x3c7   :  { %759 = shalt.err (!%p756_p11)
}
 0x3c8   :  { %520 = dma.vmem_to_hbm [thread:$0]  %s515_s29, 512, %s922_s5, [#allocation12], %s784_s26, %s784_s26, %s785_s27  }
 0x3c9   :  { %766 = dma.done.wait [#allocation6], 512  }
 0x3ca   :  { %767 = vsyncadd [#allocation6], 4294966784 }
 0x3cb   :  { %768 = dma.done.wait [#allocation12], 512  }
 0x3cc   :  { %769 = vsyncadd [#allocation12], 4294966784 }
 0x3cd   :  { %527 = vsyncpa [#allocation5], 1 }
 0x3ce   :  { %528 = vsyncpa [#allocation8], 1 }
 0x3cf   :  { %529 = vsyncpa [#allocation6], 1 }
 0x3d0   :  { %530 = vsyncpa [#allocation12], 1 }
 0x3d1   :  { %531 = vsyncmov [#allocation3] }
 0x3d4   :  { %s532_s13 = vpop.sfrf %531 }
 0x3d5   :  { %p573_p12 = scmp.ne.s32.totalorder %s532_s13, 0 }
 0x3d7   :  { %536 = shalt.err (%p573_p12)  }

</bundles_post_ra>
